<compile_context>
chip_gen: v7x
topology: tpu7x:2x2x1
jax: 0.10.0
libtpu: 0.0.40
codegen_flags: <defaults>
</compile_context>

<pallas_src>
import math

import jax
import jax.numpy as jnp
from jax import lax
from jax.experimental import pallas as pl
from jax.experimental.pallas import tpu as pltpu


def _round_up(v, m):
    return ((v + m - 1) // m) * m


def _encoder_kernel(edge_ref, x_ref, w_ref, b_ref, o_ref, xp_ref, wp_ref):
    """edge_ref: (2, E) int32 in SMEM (row0 = src, row1 = dst).
    x_ref: (N, C_in); w_ref: (C_in, C_out) already scaled by exp(edge_attr);
    b_ref: (1, C_out); o_ref: (N, C_out).
    xp_ref: (N_pad, Cin_pad) f32 scratch; wp_ref: (Cin_pad, Cout_pad) f32 scratch."""
    n, c_in = x_ref.shape
    c_out = w_ref.shape[1]
    n_pad = xp_ref.shape[0]

    # --- zero-pad x / W' into MXU-friendly scratch tiles (in-kernel padding) ---
    xp_ref[...] = jnp.zeros_like(xp_ref)
    wp_ref[...] = jnp.zeros_like(wp_ref)
    xp_ref[0:n, 0:c_in] = x_ref[...]
    wp_ref[0:c_in, 0:c_out] = w_ref[...]

    # --- build dense adjacency A[i, j] = #edges j->i (+ one self loop) in-kernel ---
    row = lax.broadcasted_iota(jnp.int32, (n_pad, n_pad), 0)   # destination node i
    col = lax.broadcasted_iota(jnp.int32, (n_pad, n_pad), 1)   # source node j
    adj0 = ((row == col) & (row < n)).astype(jnp.float32)      # add_self_loops

    num_edges = edge_ref.shape[1]

    def add_edge(e, adj):
        s = edge_ref[0, e]
        d = edge_ref[1, e]
        hit = (row == d) & (col == s) & (s != d)               # remove_self_loops
        return adj + hit.astype(jnp.float32)

    adj = lax.fori_loop(0, num_edges, add_edge, adj0, unroll=True)

    # --- fused graph conv: h = x @ W', agg = A @ h, out = relu(agg + bias) ---
    h = jnp.dot(xp_ref[...], wp_ref[...], preferred_element_type=jnp.float32)
    agg = jnp.dot(adj, h, preferred_element_type=jnp.float32)
    o_ref[...] = jnp.maximum(agg[0:n, 0:c_out] + b_ref[...], 0.0)


def _encoder_pallas(edge_index, x, w_scaled, bias_2d):
    n, c_in = x.shape
    c_out = w_scaled.shape[1]
    n_pad = _round_up(max(n, 1), 8)
    cin_pad = _round_up(max(c_in, 1), 8)
    cout_pad = _round_up(max(c_out, 1), 128)

    vmem = pl.BlockSpec(memory_space=pltpu.MemorySpace.VMEM)
    grid_spec = pltpu.PrefetchScalarGridSpec(
        num_scalar_prefetch=1,            # edge_index -> SMEM
        grid=(1,),
        in_specs=[vmem, vmem, vmem],      # x, W', bias: whole arrays in VMEM
        out_specs=vmem,
        scratch_shapes=[
            pltpu.VMEM((n_pad, cin_pad), jnp.float32),      # padded x
            pltpu.VMEM((cin_pad, cout_pad), jnp.float32),   # padded W'
        ],
    )
    return pl.pallas_call(
        _encoder_kernel,
        out_shape=jax.ShapeDtypeStruct((n, c_out), jnp.float32),
        grid_spec=grid_spec,
        compiler_params=pltpu.CompilerParams(
            dimension_semantics=("arbitrary",)),
    )(edge_index, x, w_scaled, bias_2d)


@jax.jit
def custom_encoder_forward(x, edge_index, weight, bias, edge_attr):
    """x: (N, C_in) f32; edge_index: (2, E) int [src; dst]; weight: (C_in, C_out);
    bias: (C_out,); edge_attr: (C_out,) int (per-output-channel attribute)."""
    c_out = weight.shape[1]
    # Fold alpha = exp(edge_attr) into the weight columns (per-out-channel scale
    # commutes through both matmuls): drops one input DMA and one VPU multiply.
    alpha = jnp.exp(edge_attr.astype(jnp.float32))
    w_scaled = weight.astype(jnp.float32) * alpha[None, :]
    bias_2d = bias.astype(jnp.float32).reshape(1, c_out)
    # TODO(synk): if many graphs are encoded per step, add a leading batch grid
    # axis (dimension_semantics=("parallel", ...)) instead of separate calls.
    return _encoder_pallas(edge_index.astype(jnp.int32),
                           x.astype(jnp.float32), w_scaled, bias_2d)


def reference_forward(x, edge_index, weight, bias, edge_attr):
    n = x.shape[0]
    h = x @ weight
    src, dst = edge_index[0], edge_index[1]
    keep = (src != dst).astype(jnp.float32)
    adj = jnp.zeros((n, n), jnp.float32).at[dst, src].add(keep) + jnp.eye(n)
    alpha = jnp.exp(edge_attr.astype(jnp.float32))
    agg = adj @ h
    return jnp.maximum(agg * alpha[None, :] + bias[None, :], 0.0)


if __name__ == "__main__":
    key = jax.random.PRNGKey(0)

    # Node features from the module source (4 nodes, 5 input channels).
    x = jnp.array(
        [[35, 21, 42, 52, 3],
         [12, 32, 32, 12, 43],
         [1, 3, 4, 3, 5],
         [4, 5, 3, 19, 5]], dtype=jnp.float32)

    # 5 directed edges among the 4 nodes: row0 = source, row1 = target.
    edge_index = jnp.array([[0, 1, 1, 2, 3],
                            [1, 2, 0, 3, 0]], dtype=jnp.int32)

    # Per-channel attribute (len == out_channels) from the module source.
    edge_attr = jnp.array([5, 3, 4, 2, 1], dtype=jnp.int32)

    in_channels, out_channels = 5, 5

    # Glorot-uniform weight, zero bias (deterministic, matches reset_parameters).
    limit = math.sqrt(6.0 / (in_channels + out_channels))
    weight = jax.random.uniform(
        key, (in_channels, out_channels), jnp.float32, minval=-limit, maxval=limit)
    bias = jnp.zeros((out_channels,), jnp.float32)

    out = custom_encoder_forward(x, edge_index, weight, bias, edge_attr)
    out = jax.block_until_ready(out)

    ref = reference_forward(x, edge_index, weight, bias, edge_attr)
    assert out.shape == (4, 5)
    # Folding exp(edge_attr) into W reassociates f32 rounding; use a
    # scale-aware absolute tolerance (values reach ~1e4).
    atol = 1e-4 * float(jnp.max(jnp.abs(ref))) + 1e-4
    assert jnp.allclose(out, ref, rtol=1e-4, atol=atol), (out, ref)

    print("KERNEL_OK")
</pallas_src>

<mosaic_0001>
module attributes {stable_mosaic.version = 11 : i64} {
  func.func @_encoder_kernel(%arg0: i32, %arg1: memref<2x5xi32, #tpu.memory_space<smem>>, %arg2: memref<4x5xf32, #tpu.memory_space<vmem>>, %arg3: memref<5x5xf32, #tpu.memory_space<vmem>>, %arg4: memref<1x5xf32, #tpu.memory_space<vmem>>, %arg5: memref<4x5xf32, #tpu.memory_space<vmem>>, %arg6: memref<8x8xf32, #tpu.memory_space<vmem>>, %arg7: memref<8x128xf32, #tpu.memory_space<vmem>>) attributes {dimension_semantics = [#tpu.dimension_semantics<arbitrary>], iteration_bounds = array<i64: 1>, scalar_prefetch = 1 : i64, scratch_operands = 2 : i64, tpu.core_type = #tpu.core_type<tc>, window_params = [{pipeline_mode = #tpu.pipeline_mode<synchronous>, transform_indices = @transform_0, window_bounds = array<i64: 4, 5>}, {pipeline_mode = #tpu.pipeline_mode<synchronous>, transform_indices = @transform_1, window_bounds = array<i64: 5, 5>}, {pipeline_mode = #tpu.pipeline_mode<synchronous>, transform_indices = @transform_2, window_bounds = array<i64: 1, 5>}, {pipeline_mode = #tpu.pipeline_mode<synchronous>, transform_indices = @transform_3, window_bounds = array<i64: 4, 5>}]} {
    %cst = arith.constant 0.000000e+00 : f32
    %0 = vector.broadcast %cst : f32 to vector<8x8xf32>
    %c0 = arith.constant 0 : index
    %c0_0 = arith.constant 0 : index
    %1 = vector.load %arg6[%c0, %c0_0] : memref<8x8xf32, #tpu.memory_space<vmem>>, vector<8x8xf32>
    tpu.vector_store %arg6[%c0, %c0_0], %0 {strides = array<i32>} : memref<8x8xf32, #tpu.memory_space<vmem>>, vector<8x8xf32>,
    %cst_1 = arith.constant 0.000000e+00 : f32
    %2 = vector.broadcast %cst_1 : f32 to vector<8x128xf32>
    %c0_2 = arith.constant 0 : index
    %c0_3 = arith.constant 0 : index
    %3 = vector.load %arg7[%c0_2, %c0_3] : memref<8x128xf32, #tpu.memory_space<vmem>>, vector<8x128xf32>
    tpu.vector_store %arg7[%c0_2, %c0_3], %2 {strides = array<i32>} : memref<8x128xf32, #tpu.memory_space<vmem>>, vector<8x128xf32>,
    %c0_4 = arith.constant 0 : index
    %c0_5 = arith.constant 0 : index
    %4 = vector.load %arg2[%c0_4, %c0_5] : memref<4x5xf32, #tpu.memory_space<vmem>>, vector<4x5xf32>
    %c0_6 = arith.constant 0 : index
    %c0_7 = arith.constant 0 : index
    %5 = vector.load %arg6[%c0_6, %c0_7] : memref<8x8xf32, #tpu.memory_space<vmem>>, vector<4x5xf32>
    tpu.vector_store %arg6[%c0_6, %c0_7], %4 {strides = array<i32>} : memref<8x8xf32, #tpu.memory_space<vmem>>, vector<4x5xf32>,
    %c0_8 = arith.constant 0 : index
    %c0_9 = arith.constant 0 : index
    %6 = vector.load %arg3[%c0_8, %c0_9] : memref<5x5xf32, #tpu.memory_space<vmem>>, vector<5x5xf32>
    %c0_10 = arith.constant 0 : index
    %c0_11 = arith.constant 0 : index
    %7 = vector.load %arg7[%c0_10, %c0_11] : memref<8x128xf32, #tpu.memory_space<vmem>>, vector<5x5xf32>
    tpu.vector_store %arg7[%c0_10, %c0_11], %6 {strides = array<i32>} : memref<8x128xf32, #tpu.memory_space<vmem>>, vector<5x5xf32>,
    %8 = tpu.iota {dimensions = array<i32: 0>} : vector<8x8xi32>
    %9 = tpu.iota {dimensions = array<i32: 1>} : vector<8x8xi32>
    %10 = arith.cmpi eq, %8, %9 : vector<8x8xi32>
    %c4_i32 = arith.constant 4 : i32
    %11 = vector.broadcast %c4_i32 : i32 to vector<8x8xi32>
    %12 = arith.cmpi slt, %8, %11 : vector<8x8xi32>
    %13 = arith.andi %10, %12 : vector<8x8xi1>
    %14 = arith.extui %13 : vector<8x8xi1> to vector<8x8xi32>
    %15 = arith.sitofp %14 : vector<8x8xi32> to vector<8x8xf32>
    %c0_i32 = arith.constant 0 : i32
    %c0_12 = arith.constant 0 : index
    %16 = arith.index_cast %c0_i32 : i32 to index
    %17 = memref.load %arg1[%c0_12, %16] : memref<2x5xi32, #tpu.memory_space<smem>>
    %c1 = arith.constant 1 : index
    %18 = arith.index_cast %c0_i32 : i32 to index
    %19 = memref.load %arg1[%c1, %18] : memref<2x5xi32, #tpu.memory_space<smem>>
    %20 = vector.broadcast %19 : i32 to vector<8x8xi32>
    %21 = arith.cmpi eq, %8, %20 : vector<8x8xi32>
    %22 = vector.broadcast %17 : i32 to vector<8x8xi32>
    %23 = arith.cmpi eq, %9, %22 : vector<8x8xi32>
    %24 = arith.andi %21, %23 : vector<8x8xi1>
    %25 = arith.cmpi ne, %17, %19 : i32
    %26 = vector.broadcast %25 : i1 to vector<8x8xi1>
    %27 = arith.andi %24, %26 : vector<8x8xi1>
    %28 = arith.extui %27 : vector<8x8xi1> to vector<8x8xi32>
    %29 = arith.sitofp %28 : vector<8x8xi32> to vector<8x8xf32>
    %30 = arith.addf %15, %29 : vector<8x8xf32>
    %c1_i32 = arith.constant 1 : i32
    %c0_13 = arith.constant 0 : index
    %31 = arith.index_cast %c1_i32 : i32 to index
    %32 = memref.load %arg1[%c0_13, %31] : memref<2x5xi32, #tpu.memory_space<smem>>
    %c1_14 = arith.constant 1 : index
    %33 = arith.index_cast %c1_i32 : i32 to index
    %34 = memref.load %arg1[%c1_14, %33] : memref<2x5xi32, #tpu.memory_space<smem>>
    %35 = vector.broadcast %34 : i32 to vector<8x8xi32>
    %36 = arith.cmpi eq, %8, %35 : vector<8x8xi32>
    %37 = vector.broadcast %32 : i32 to vector<8x8xi32>
    %38 = arith.cmpi eq, %9, %37 : vector<8x8xi32>
    %39 = arith.andi %36, %38 : vector<8x8xi1>
    %40 = arith.cmpi ne, %32, %34 : i32
    %41 = vector.broadcast %40 : i1 to vector<8x8xi1>
    %42 = arith.andi %39, %41 : vector<8x8xi1>
    %43 = arith.extui %42 : vector<8x8xi1> to vector<8x8xi32>
    %44 = arith.sitofp %43 : vector<8x8xi32> to vector<8x8xf32>
    %45 = arith.addf %30, %44 : vector<8x8xf32>
    %c2_i32 = arith.constant 2 : i32
    %c0_15 = arith.constant 0 : index
    %46 = arith.index_cast %c2_i32 : i32 to index
    %47 = memref.load %arg1[%c0_15, %46] : memref<2x5xi32, #tpu.memory_space<smem>>
    %c1_16 = arith.constant 1 : index
    %48 = arith.index_cast %c2_i32 : i32 to index
    %49 = memref.load %arg1[%c1_16, %48] : memref<2x5xi32, #tpu.memory_space<smem>>
    %50 = vector.broadcast %49 : i32 to vector<8x8xi32>
    %51 = arith.cmpi eq, %8, %50 : vector<8x8xi32>
    %52 = vector.broadcast %47 : i32 to vector<8x8xi32>
    %53 = arith.cmpi eq, %9, %52 : vector<8x8xi32>
    %54 = arith.andi %51, %53 : vector<8x8xi1>
    %55 = arith.cmpi ne, %47, %49 : i32
    %56 = vector.broadcast %55 : i1 to vector<8x8xi1>
    %57 = arith.andi %54, %56 : vector<8x8xi1>
    %58 = arith.extui %57 : vector<8x8xi1> to vector<8x8xi32>
    %59 = arith.sitofp %58 : vector<8x8xi32> to vector<8x8xf32>
    %60 = arith.addf %45, %59 : vector<8x8xf32>
    %c3_i32 = arith.constant 3 : i32
    %c0_17 = arith.constant 0 : index
    %61 = arith.index_cast %c3_i32 : i32 to index
    %62 = memref.load %arg1[%c0_17, %61] : memref<2x5xi32, #tpu.memory_space<smem>>
    %c1_18 = arith.constant 1 : index
    %63 = arith.index_cast %c3_i32 : i32 to index
    %64 = memref.load %arg1[%c1_18, %63] : memref<2x5xi32, #tpu.memory_space<smem>>
    %65 = vector.broadcast %64 : i32 to vector<8x8xi32>
    %66 = arith.cmpi eq, %8, %65 : vector<8x8xi32>
    %67 = vector.broadcast %62 : i32 to vector<8x8xi32>
    %68 = arith.cmpi eq, %9, %67 : vector<8x8xi32>
    %69 = arith.andi %66, %68 : vector<8x8xi1>
    %70 = arith.cmpi ne, %62, %64 : i32
    %71 = vector.broadcast %70 : i1 to vector<8x8xi1>
    %72 = arith.andi %69, %71 : vector<8x8xi1>
    %73 = arith.extui %72 : vector<8x8xi1> to vector<8x8xi32>
    %74 = arith.sitofp %73 : vector<8x8xi32> to vector<8x8xf32>
    %75 = arith.addf %60, %74 : vector<8x8xf32>
    %c4_i32_19 = arith.constant 4 : i32
    %c0_20 = arith.constant 0 : index
    %76 = arith.index_cast %c4_i32_19 : i32 to index
    %77 = memref.load %arg1[%c0_20, %76] : memref<2x5xi32, #tpu.memory_space<smem>>
    %c1_21 = arith.constant 1 : index
    %78 = arith.index_cast %c4_i32_19 : i32 to index
    %79 = memref.load %arg1[%c1_21, %78] : memref<2x5xi32, #tpu.memory_space<smem>>
    %80 = vector.broadcast %79 : i32 to vector<8x8xi32>
    %81 = arith.cmpi eq, %8, %80 : vector<8x8xi32>
    %82 = vector.broadcast %77 : i32 to vector<8x8xi32>
    %83 = arith.cmpi eq, %9, %82 : vector<8x8xi32>
    %84 = arith.andi %81, %83 : vector<8x8xi1>
    %85 = arith.cmpi ne, %77, %79 : i32
    %86 = vector.broadcast %85 : i1 to vector<8x8xi1>
    %87 = arith.andi %84, %86 : vector<8x8xi1>
    %88 = arith.extui %87 : vector<8x8xi1> to vector<8x8xi32>
    %89 = arith.sitofp %88 : vector<8x8xi32> to vector<8x8xf32>
    %90 = arith.addf %75, %89 : vector<8x8xf32>
    %c5_i32 = arith.constant 5 : i32
    %c0_22 = arith.constant 0 : index
    %c0_23 = arith.constant 0 : index
    %91 = vector.load %arg6[%c0_22, %c0_23] : memref<8x8xf32, #tpu.memory_space<vmem>>, vector<8x8xf32>
    %c0_24 = arith.constant 0 : index
    %c0_25 = arith.constant 0 : index
    %92 = vector.load %arg7[%c0_24, %c0_25] : memref<8x128xf32, #tpu.memory_space<vmem>>, vector<8x128xf32>
    %cst_26 = arith.constant dense<0.000000e+00> : vector<8x128xf32>
    %93 = tpu.matmul %91, %92, %cst_26 {dimension_numbers = #tpu.dot_dimension_numbers<[1], [0], [0], [1], [0, 0, 1, 1], [], []>} : vector<8x8xf32>, vector<8x128xf32>, vector<8x128xf32> -> vector<8x128xf32>
    %cst_27 = arith.constant dense<0.000000e+00> : vector<8x128xf32>
    %94 = tpu.matmul %90, %93, %cst_27 {dimension_numbers = #tpu.dot_dimension_numbers<[1], [0], [0], [1], [0, 0, 1, 1], [], []>} : vector<8x8xf32>, vector<8x128xf32>, vector<8x128xf32> -> vector<8x128xf32>
    %95 = vector.extract_strided_slice %94 {offsets = [0, 0], sizes = [4, 5], strides = [1, 1]} : vector<8x128xf32> to vector<4x5xf32>
    %c0_28 = arith.constant 0 : index
    %c0_29 = arith.constant 0 : index
    %96 = vector.load %arg4[%c0_28, %c0_29] : memref<1x5xf32, #tpu.memory_space<vmem>>, vector<1x5xf32>
    %97 = vector.broadcast %96 : vector<1x5xf32> to vector<4x5xf32>
    %98 = arith.addf %95, %97 : vector<4x5xf32>
    %cst_30 = arith.constant 0.000000e+00 : f32
    %99 = vector.broadcast %cst_30 : f32 to vector<4x5xf32>
    %100 = arith.maximumf %98, %99 : vector<4x5xf32>
    %c0_31 = arith.constant 0 : index
    %c0_32 = arith.constant 0 : index
    %101 = vector.load %arg5[%c0_31, %c0_32] : memref<4x5xf32, #tpu.memory_space<vmem>>, vector<4x5xf32>
    tpu.vector_store %arg5[%c0_31, %c0_32], %100 {strides = array<i32>} : memref<4x5xf32, #tpu.memory_space<vmem>>, vector<4x5xf32>,
    return
  }
  func.func @transform_0(%arg0: i32, %arg1: memref<2x5xi32, #tpu.memory_space<smem>>) -> (i32, i32) {
    %c0_i32 = arith.constant 0 : i32
    %c0_i32_0 = arith.constant 0 : i32
    %c0_i32_1 = arith.constant 0 : i32
    return %c0_i32, %c0_i32_0 : i32, i32
  }
  func.func @transform_1(%arg0: i32, %arg1: memref<2x5xi32, #tpu.memory_space<smem>>) -> (i32, i32) {
    %c0_i32 = arith.constant 0 : i32
    %c0_i32_0 = arith.constant 0 : i32
    %c0_i32_1 = arith.constant 0 : i32
    return %c0_i32, %c0_i32_0 : i32, i32
  }
  func.func @transform_2(%arg0: i32, %arg1: memref<2x5xi32, #tpu.memory_space<smem>>) -> (i32, i32) {
    %c0_i32 = arith.constant 0 : i32
    %c0_i32_0 = arith.constant 0 : i32
    %c0_i32_1 = arith.constant 0 : i32
    return %c0_i32, %c0_i32_0 : i32, i32
  }
  func.func @transform_3(%arg0: i32, %arg1: memref<2x5xi32, #tpu.memory_space<smem>>) -> (i32, i32) {
    %c0_i32 = arith.constant 0 : i32
    %c0_i32_0 = arith.constant 0 : i32
    %c0_i32_1 = arith.constant 0 : i32
    return %c0_i32, %c0_i32_0 : i32, i32
  }
}

</mosaic_0001>

<bundles_post_ra>
// kernel: custom_encoder_forward.1
= control target key start
LH: loop header
LB: loop body
LE: loop exit
PB: predicated region body
PF: predicated region fallthrough
CT: control target
= control target key end

     0   :  { %s506_s0 = inlined_call_operand.vmem [shape: s32[2,5], index: 0, kind: input, shape index: {}]   ;;  %s507_s1 = inlined_call_operand.vmem [shape: f32[4,5], index: 1, kind: input, shape index: {}]   ;;  %s508_s2 = inlined_call_operand.vmem [shape: f32[5,5], index: 2, kind: input, shape index: {}]   ;;  %s509_s3 = inlined_call_operand.vmem [shape: f32[1,5], index: 3, kind: input, shape index: {}]   ;;  %s510_s4 = inlined_call_operand.hbm [shape: f32[4,5], index: 4, kind: output, shape index: {}]  }
   0x1   :  { %s9_s17 = sshll.u32 %s506_s0, 4  ;;  %s10_s17 = int_to_ptr.vmem [resolvable:$true] %s9_s17 }
   0x2   :  { %s323_s18 = scalar_lea.vmem %s10_s17, 32  ;;  %p328_p1 = scmp.lt.s32.totalorder %s10_s17, %s10_s17 }
   0x3   :  { %p324_p0 = scmp.ne.s32.totalorder %s10_s17, %s323_s18  ;;  %p329_p2 = scmp.lt.s32.totalorder %s323_s18, %s323_s18 }
   0x5   :  { %p330_p3 = por %p329_p2, %p328_p1 }
   0x7   :  { %p331_p4 = pnand %p330_p3, %p324_p0 }
   0x9   :  { %334 = shalt.err (!%p331_p4)  }
   0xa   :  { %s361_s19 = smov [#allocation5]  }
   0xb   :  { %12 = dma.vmem_to_smem %s10_s17, 32, %s361_s19, [#allocation4] }
   0xc   :  { %357 = dma.done.wait [#allocation4], 32 }
   0xd   :  { %358 = vsyncadd [#allocation4], 4294967264 }
   0xe   :  { %14 = sfence }
   0xf   :  { %v28_v0 = vld [vmem:[%s508_s2] sm:$0x1f]  ;;  %vm29_vm0 = vcmask 36864   ;;  %vm22_vm1 = vcmask 64512   ;;  %v362_v1 = vmov 0.0   ;;  %vm363_vm2 = vmmov 0  }
  0x10   :  { %309 = vmatprep.subr.mxu0 %v362_v1  ;;  %24 = vst [vmem:[#allocation3] sm:$0xff] %v362_v1  ;;  %311 = vmatprep.mubr.msk.f32.mxu0 %vm363_vm2, %v362_v1  ;;  %23 = vst.msk [vmem:[#allocation2] sm:$0xff] %vm22_vm1, %v362_v1  ;;  %v25_v2 = vld [vmem:[%s507_s1] sm:$0xf]  ;;  %vm26_vm3 = vcmask 35840  }
  0x11   :  { %15 = vsyncpa [#allocation7], 0  ;;  %30 = vst.msk [vmem:[#allocation3] sm:$0x1f] %vm29_vm0, %v28_v0  ;;  %314 = vmatprep.subr.mxu1 %v362_v1  ;;  %316 = vmatprep.mubr.msk.f32.mxu1 %vm363_vm2, %v362_v1  ;;  %s40_s2 = sld [smem:[#allocation5]]  ;;  %s290_s24 = sld [smem:[#allocation5 + $0x1]]  ;;  %v31_v5 = vlaneseq }
  0x12   :  { %27 = vst.msk [vmem:[#allocation2] sm:$0xf] %vm26_vm3, %v25_v2  ;;  %s288_s23 = sld [smem:[#allocation5 + $0x80]]  ;;  %s291_s25 = sld [smem:[#allocation5 + $0x81]]  ;;  %v304_v44 = vld [vmem:[%s509_s3] ss:$0 sm:$0xff] }
  0x13   :  { %s408_s26 = sld [smem:[#allocation5 + $0x2]]  ;;  %s412_s27 = sld [smem:[#allocation5 + $0x3]]  ;;  %v32_v6 = vshrl.u32 %v31_v5, 7  ;;  %v34_v7 = vand.u32 127, %v31_v5 }
  0x14   :  { %s410_s1 = sld [smem:[#allocation5 + $0x82]]  ;;  %s414_s28 = sld [smem:[#allocation5 + $0x83]] }
  0x15   :  { %s416_s30 = sld [smem:[#allocation5 + $0x4]]  ;;  %vm35_vm6 = vcmp.eq.s32.totalorder %v32_v6, %v34_v7  ;;  %vm36_vm7 = vcmp.lt.s32.totalorder %v32_v6, 4  ;;  %s364_s12 = smov [#allocation6]  }
  0x16   :  { %s420_s5 = sld [smem:[#allocation5 + $0x84]]  ;;  %vm37_vm12 = vmand %vm35_vm6, %vm36_vm7  ;;  %s279_s13 = sshll.u32 %s364_s12, 4  ;;  %s280_s13 = int_to_ptr.vmem [resolvable:$true] %s279_s13 }
  0x17   :  { %v44_v9 = vstv %s40_s2  ;;  %v59_v14 = vstv %s290_s24  ;;  %v287_v23 = vsel %vm37_vm12, 1.0, %v362_v1  ;;  %s335_s14 = scalar_lea.vmem %s280_s13, 64  ;;  %p340_p11 = scmp.lt.s32.totalorder %s280_s13, %s280_s13 }
  0x18   :  { %v116_v3 = vld [vmem:[#allocation3] sm:$0xff]  ;;  %p47_p5 = scmp.ne.s32.totalorder %s40_s2, %s288_s23  ;;  %p62_p6 = scmp.ne.s32.totalorder %s290_s24, %s291_s25  ;;  %v42_v8 = vstv %s288_s23  ;;  %vm426_vm5 = vcmp.eq.s32.totalorder %v34_v7, %v44_v9  ;;  %v57_v13 = vstv %s291_s25  ;;  %vm440_vm11 = vcmp.eq.s32.totalorder %v34_v7, %v59_v14 }
  0x19   :  { %v115_v4 = vld [vmem:[#allocation2] sm:$0xff]  ;;  %310 = vmatpush3.msra.mxu0 %v116_v3  ;;  %vm422_vm4 = vcmp.eq.s32.totalorder %v32_v6, %v42_v8  ;;  %vm436_vm10 = vcmp.eq.s32.totalorder %v32_v6, %v57_v13  ;;  %v74_v19 = vstv %s408_s26  ;;  %v89_v26 = vstv %s412_s27  ;;  %p336_p10 = scmp.ne.s32.totalorder %s280_s13, %s335_s14  ;;  %p341_p12 = scmp.lt.s32.totalorder %s335_s14, %s335_s14 }
  0x1a   :  { %312 = vmatmul.mubr.msk.f32.vlgmr.msra.gmra.mrb[0].mxu0 %vm22_vm1, %v115_v4  ;;  %s48_s29 = scalar_select %p47_p5, 1, 0  ;;  %vm46_vm8 = vmand %vm422_vm4, %vm426_vm5  ;;  %v72_v18 = vstv %s410_s1  ;;  %vm457_vm2 = vcmp.eq.s32.totalorder %v34_v7, %v74_v19  ;;  %v87_v25 = vstv %s414_s28 }
  0x1b   :  { %p77_p7 = scmp.ne.s32.totalorder %s408_s26, %s410_s1  ;;  %p92_p8 = scmp.ne.s32.totalorder %s412_s27, %s414_s28  ;;  %vm61_vm14 = vmand %vm436_vm10, %vm440_vm11  ;;  %vm453_vm0 = vcmp.eq.s32.totalorder %v32_v6, %v72_v18  ;;  %vm471_vm7 = vcmp.eq.s32.totalorder %v32_v6, %v87_v25  ;;  %v104_v33 = vstv %s416_s30 }
  0x1c   :  { %v49_v12 = vstv %s48_s29  ;;  %s63_s6 = scalar_select %p62_p6, 1, 0  ;;  %vm76_vm5 = vmand %vm453_vm0, %vm457_vm2  ;;  %v102_v32 = vstv %s420_s5 }
  0x1d   :  { %vm50_vm9 = vcmp.eq.s32.totalorder %v49_v12, 1  ;;  %s78_s7 = scalar_select %p77_p7, 1, 0  ;;  %vm103_vm12 = vcmp.eq.s32.totalorder %v32_v6, %v102_v32 }
  0x1e   :  { %v64_v17 = vstv %s63_s6  ;;  %vm51_vm13 = vmand %vm46_vm8, %vm50_vm9  ;;  %s93_s8 = scalar_select %p92_p8, 1, 0  ;;  %vm475_vm8 = vcmp.eq.s32.totalorder %v34_v7, %v89_v26 }
  0x1f   :  { %vm65_vm15 = vcmp.eq.s32.totalorder %v64_v17, 1  ;;  %v79_v22 = vstv %s78_s7  ;;  %p107_p9 = scmp.ne.s32.totalorder %s416_s30, %s420_s5  ;;  %v289_v24 = vsel %vm51_vm13, 1.0, %v362_v1  ;;  %vm91_vm10 = vmand %vm471_vm7, %vm475_vm8  ;;  %vm105_vm13 = vcmp.eq.s32.totalorder %v34_v7, %v104_v33  ;;  %p342_p13 = por %p341_p12, %p340_p11 }
  0x20   :  { %vm66_vm4 = vmand %vm61_vm14, %vm65_vm15  ;;  %vm80_vm6 = vcmp.eq.s32.totalorder %v79_v22, 1  ;;  %v54_v27 = vadd.f32 %v289_v24, %v287_v23  ;;  %v94_v30 = vstv %s93_s8 }
  0x21   :  { %s108_s9 = scalar_select %p107_p9, 1, 0  ;;  %v292_v31 = vsel %vm66_vm4, 1.0, %v362_v1  ;;  %vm81_vm9 = vmand %vm76_vm5, %vm80_vm6  ;;  %vm95_vm11 = vcmp.eq.s32.totalorder %v94_v30, 1 }
  0x22   :  { %v69_v34 = vadd.f32 %v292_v31, %v54_v27  ;;  %v295_v36 = vsel %vm81_vm9, 1.0, %v362_v1  ;;  %vm96_vm14 = vmand %vm91_vm10, %vm95_vm11  ;;  %p343_p0 = pnand %p342_p13, %p336_p10 }
  0x23   :  { %v109_v35 = vstv %s108_s9  ;;  %vm106_vm15 = vmand %vm103_vm12, %vm105_vm13  ;;  %v298_v38 = vsel %vm96_vm14, 1.0, %v362_v1 }
  0x24   :  { %vm110_vm0 = vcmp.eq.s32.totalorder %v109_v35, 1  ;;  %v84_v37 = vadd.f32 %v295_v36, %v69_v34 }
  0x25   :  { %vm111_vm2 = vmand %vm106_vm15, %vm110_vm0 }
  0x26   :  { %v99_v39 = vadd.f32 %v298_v38, %v84_v37  ;;  %v301_v40 = vsel %vm111_vm2, 1.0, %v362_v1 }
  0x28   :  { %v114_v41 = vadd.f32 %v301_v40, %v99_v39 }
  0xed   :  { %v186_v42 = vpop.f32.mrb[0].mxu0 }
  0xee   :  { %v313_v43 = vpop.f32.mrb[1].mxu0  ;;  %315 = vmatpush3.msra.mxu1 %v186_v42 }
  0xef   :  { %317 = vmatmul.mubr.msk.f32.vlgmr.msra.gmra.mrb[0].mxu1 %vm22_vm1, %v114_v41 }
 0x1c2   :  { %v259_v45 = vpop.f32.mrb[0].mxu1 }
 0x1c3   :  { %v270_v46 = vadd.f32 %v304_v44, %v259_v45  ;;  %v318_v47 = vpop.f32.mrb[1].mxu1 }
 0x1c5   :  { %v271_v48 = vmax.f32 %v270_v46, 0.0 }
 0x1c7   :  { %272 = vst.msk [vmem:[#allocation6] sm:$0xf] %vm26_vm3, %v271_v48 }
 0x1c8   :  { %346 = shalt.err (!%p343_p0)
}
 0x1c9   :  { %s347_s3 = scalar_lea.hbm %s510_s4, 64 }
 0x1ca   :  { %p348_p1 = scmp.ne.s32.totalorder %s510_s4, %s347_s3  ;;  %p351_p2 = scmp.lt.u32.totalorder %s347_s3, %s510_s4 }
 0x1cc   :  { %p353_p3 = pnand %p351_p2, %p348_p1 }
 0x1ce   :  { %356 = shalt.err (!%p353_p3)
}
 0x1cf   :  { %282 = dma.vmem_to_hbm [thread:$0]  %s280_s13, 64, %s510_s4, [#allocation7]  }
 0x1d0   :  { %359 = dma.done.wait [#allocation7], 64  }
 0x1d1   :  { %360 = vsyncadd [#allocation7], 4294967232 }
 0x1d2   :  { %286 = vsyncpa [#allocation7], 1 }

</bundles_post_ra>
